<compile_context>
chip_gen: v7x
topology: tpu7x:2x2x1
jax: 0.10.0
libtpu: 0.0.40
codegen_flags: <defaults>
</compile_context>

<pallas_src>
import jax
import jax.numpy as jnp
from jax import lax
from jax.experimental import pallas as pl
from jax.experimental.pallas import tpu as pltpu

_INV_SQRT2 = 0.7071067811865476


def _round_up(a, b):
    return ((a + b - 1) // b) * b


# ---------------- Pass 1: per-block partial statistics of x (no y materialized) ----------
def _stats_kernel(x_ref, sum_ref, gram_ref):
    x = x_ref[0]                                              # (Cin, T), lanes = spatial
    # partial per-channel sum of x over this tile
    sum_ref[0] = jnp.sum(x, axis=1, keepdims=True)            # (Cin, 1)
    # partial Gram matrix  x @ x^T  (contraction over the lane axis -> MXU)
    gram_ref[0] = lax.dot_general(
        x, x, (((1,), (1,)), ((), ())),
        preferred_element_type=jnp.float32)                   # (Cin, Cin)


# ---------------- Pass 2: folded conv+BN matmul + exact GELU, lane-dense ------------------
def _conv_bn_gelu_kernel(x_ref, wf_ref, bf_ref, o_ref):
    x = x_ref[0]                                              # (Cin, T)
    z = jnp.dot(wf_ref[...], x, preferred_element_type=jnp.float32)   # (Cout, T) on MXU
    z = z + bf_ref[...]                                       # (Cout, 1) bias broadcast
    o_ref[0] = 0.5 * z * (1.0 + lax.erf(z * _INV_SQRT2))      # exact GELU (erf on EUP)


# ---------------- Tile selection: big lane-dense tiles, bounded by a VMEM budget ----------
def _pick_tile(DHW, Cin, Cout, max_tile=4096, vmem_budget=8 << 20):
    # double-buffered f32 input (Cin x tile) + output (Cout x tile) blocks per grid step
    per_lane = 4 * 2 * (Cin + Cout)
    cap = max(128, (vmem_budget // per_lane) // 128 * 128)
    max_tile = min(max_tile, cap)
    n_tiles = pl.cdiv(DHW, max_tile)
    tile = _round_up(pl.cdiv(DHW, n_tiles), 128)
    return n_tiles, tile


# ---------------- Wrapper ------------------------------------------------------------------
def conv3d_1_forward(x, weight, gamma, beta, *, eps=1e-3):
    """x: (N, Cin, D, H, W) f32, weight: (Cout, Cin, 1, 1, 1) f32, gamma/beta: (Cout,)."""
    N, Cin, D, H, W = x.shape
    Cout = weight.shape[0]
    DHW = D * H * W
    M = N * DHW                                   # true voxel count (BN normalizer)

    n_tiles, tile = _pick_tile(DHW, Cin, Cout)
    DHW_pad = n_tiles * tile

    x3 = x.reshape(N, Cin, DHW).astype(jnp.float32)           # free reshape, no transpose
    if DHW_pad != DHW:
        # zeros contribute nothing to sum / Gram; normalization uses the true M.
        x3 = jnp.pad(x3, ((0, 0), (0, 0), (0, DHW_pad - DHW)))

    w2 = weight.reshape(Cout, Cin).astype(jnp.float32)

    grid = (N, n_tiles)
    parallel2 = pltpu.CompilerParams(dimension_semantics=("parallel", "parallel"))

    # ---- Pass 1: partial sum(x) and Gram(x) per (batch, spatial-tile) block
    sum_p, gram_p = pl.pallas_call(
        _stats_kernel,
        grid=grid,
        in_specs=[pl.BlockSpec((1, Cin, tile), lambda n, j: (n, 0, j))],
        out_specs=(
            pl.BlockSpec((1, Cin, 1), lambda n, j: (n * n_tiles + j, 0, 0)),
            pl.BlockSpec((1, Cin, Cin), lambda n, j: (n * n_tiles + j, 0, 0)),
        ),
        out_shape=(
            jax.ShapeDtypeStruct((N * n_tiles, Cin, 1), jnp.float32),
            jax.ShapeDtypeStruct((N * n_tiles, Cin, Cin), jnp.float32),
        ),
        compiler_params=parallel2,
    )(x3)

    # ---- Tiny XLA glue: exact batch stats of y = W x, fold BN into the conv weights.
    sum_x = jnp.sum(sum_p, axis=0)[:, 0]                      # (Cin,)
    gram = jnp.sum(gram_p, axis=0)                            # (Cin, Cin)
    mean = (w2 @ sum_x) / M                                   # (Cout,)  batch mean of y
    ey2 = jnp.sum((w2 @ gram) * w2, axis=1) / M               # (Cout,)  E[y^2] = diag(W G W^T)/M
    var = jnp.maximum(ey2 - mean * mean, 0.0)                 # biased batch variance, clamped >= 0
    inv = lax.rsqrt(var + eps)
    scale = gamma.astype(jnp.float32) * inv                   # (Cout,)
    wf = w2 * scale[:, None]                                  # folded conv+BN weight (Cout, Cin)
    bf = (beta.astype(jnp.float32) - mean * scale).reshape(Cout, 1)

    # ---- Pass 2: y' = W' x + b' followed by exact GELU, written lane-dense in NC(DHW) layout.
    out3 = pl.pallas_call(
        _conv_bn_gelu_kernel,
        grid=grid,
        in_specs=[
            pl.BlockSpec((1, Cin, tile), lambda n, j: (n, 0, j)),
            pl.BlockSpec((Cout, Cin), lambda n, j: (0, 0)),
            pl.BlockSpec((Cout, 1), lambda n, j: (0, 0)),
        ],
        out_specs=pl.BlockSpec((1, Cout, tile), lambda n, j: (n, 0, j)),
        out_shape=jax.ShapeDtypeStruct((N, Cout, DHW_pad), jnp.float32),
        compiler_params=parallel2,
    )(x3, wf, bf)

    if DHW_pad != DHW:
        out3 = out3[:, :, :DHW]
    return out3.reshape(N, Cout, D, H, W)                     # free reshape, no transpose


# ---------------- Pure-JAX reference (for correctness check) ------------------------------
def reference_forward(x, weight, gamma, beta, eps=1e-3):
    N, Cin, D, H, W = x.shape
    Cout = weight.shape[0]
    y = jnp.einsum("ncdhw,oc->nodhw", x, weight.reshape(Cout, Cin))
    mean = jnp.mean(y, axis=(0, 2, 3, 4), keepdims=True)
    var = jnp.mean((y - mean) ** 2, axis=(0, 2, 3, 4), keepdims=True)
    z = (y - mean) / jnp.sqrt(var + eps)
    z = z * gamma.reshape(1, Cout, 1, 1, 1) + beta.reshape(1, Cout, 1, 1, 1)
    return 0.5 * z * (1.0 + jax.lax.erf(z / jnp.sqrt(2.0)))


def _run_case(key, N, Cin, Cout, D, H, W):
    k_x, k_w, k_g, k_b = jax.random.split(key, 4)
    x = jax.random.normal(k_x, (N, Cin, D, H, W), dtype=jnp.float32)
    # Conv3d(Cin, Cout, kernel_size=1, bias=False) weight: (Cout, Cin, 1, 1, 1)
    weight = 0.1 * jax.random.normal(k_w, (Cout, Cin, 1, 1, 1), dtype=jnp.float32)
    # BatchNorm3d affine params (perturbed from default init to exercise the affine path)
    gamma = 1.0 + 0.1 * jax.random.normal(k_g, (Cout,), dtype=jnp.float32)
    beta = 0.1 * jax.random.normal(k_b, (Cout,), dtype=jnp.float32)

    out = jax.block_until_ready(conv3d_1_forward(x, weight, gamma, beta))
    ref = reference_forward(x, weight, gamma, beta)
    assert out.shape == (N, Cout, D, H, W)
    assert jnp.allclose(out, ref, atol=1e-4, rtol=1e-4), "mismatch vs reference"


if __name__ == "__main__":
    key = jax.random.PRNGKey(0)
    k1, k2 = jax.random.split(key)

    # lane-aligned spatial extent (DHW = 256, multiple of 128)
    _run_case(k1, N=2, Cin=4, Cout=8, D=4, H=8, W=8)
    # ragged spatial extent + non-multiple-of-8 channels (exercises padding path)
    _run_case(k2, N=1, Cin=3, Cout=5, D=3, H=5, W=7)

    print("KERNEL_OK")
</pallas_src>

<mosaic_0001>
module attributes {stable_mosaic.version = 11 : i64} {
  func.func @_stats_kernel(%arg0: i32, %arg1: i32, %arg2: memref<1x4x256xf32, #tpu.memory_space<vmem>>, %arg3: memref<1x4x1xf32, #tpu.memory_space<vmem>>, %arg4: memref<1x4x4xf32, #tpu.memory_space<vmem>>) attributes {dimension_semantics = [#tpu.dimension_semantics<parallel>, #tpu.dimension_semantics<parallel>], iteration_bounds = array<i64: 2, 1>, scalar_prefetch = 0 : i64, scratch_operands = 0 : i64, tpu.core_type = #tpu.core_type<tc>, window_params = [{transform_indices = @transform_0, window_bounds = array<i64: 1, 4, 256>}, {transform_indices = @transform_1, window_bounds = array<i64: 1, 4, 1>}, {transform_indices = @transform_2, window_bounds = array<i64: 1, 4, 4>}]} {
    %c0 = arith.constant 0 : index
    %c0_0 = arith.constant 0 : index
    %c0_1 = arith.constant 0 : index
    %0 = vector.load %arg2[%c0, %c0_0, %c0_1] : memref<1x4x256xf32, #tpu.memory_space<vmem>>, vector<1x4x256xf32>
    %1 = vector.shape_cast %0 : vector<1x4x256xf32> to vector<4x256xf32>
    %cst = arith.constant dense<0.000000e+00> : vector<4xf32>
    %2 = vector.multi_reduction <add>, %1, %cst [1] : vector<4x256xf32> to vector<4xf32>
    %3 = vector.shape_cast %2 : vector<4xf32> to vector<4x1xf32>
    %c0_2 = arith.constant 0 : index
    %c0_3 = arith.constant 0 : index
    %c0_4 = arith.constant 0 : index
    %4 = vector.load %arg3[%c0_2, %c0_3, %c0_4] : memref<1x4x1xf32, #tpu.memory_space<vmem>>, vector<1x4x1xf32>
    %5 = vector.shape_cast %4 : vector<1x4x1xf32> to vector<4x1xf32>
    %6 = vector.shape_cast %3 : vector<4x1xf32> to vector<1x4x1xf32>
    tpu.vector_store %arg3[%c0_2, %c0_3, %c0_4], %6 {strides = array<i32>} : memref<1x4x1xf32, #tpu.memory_space<vmem>>, vector<1x4x1xf32>,
    %cst_5 = arith.constant dense<0.000000e+00> : vector<4x4xf32>
    %7 = tpu.matmul %1, %1, %cst_5 {dimension_numbers = #tpu.dot_dimension_numbers<[1], [1], [0], [0], [0, 0, 1, 0], [], []>} : vector<4x256xf32>, vector<4x256xf32>, vector<4x4xf32> -> vector<4x4xf32>
    %c0_6 = arith.constant 0 : index
    %c0_7 = arith.constant 0 : index
    %c0_8 = arith.constant 0 : index
    %8 = vector.load %arg4[%c0_6, %c0_7, %c0_8] : memref<1x4x4xf32, #tpu.memory_space<vmem>>, vector<1x4x4xf32>
    %9 = vector.shape_cast %8 : vector<1x4x4xf32> to vector<4x4xf32>
    %10 = vector.shape_cast %7 : vector<4x4xf32> to vector<1x4x4xf32>
    tpu.vector_store %arg4[%c0_6, %c0_7, %c0_8], %10 {strides = array<i32>} : memref<1x4x4xf32, #tpu.memory_space<vmem>>, vector<1x4x4xf32>,
    return
  }
  func.func @transform_0(%arg0: i32, %arg1: i32) -> (i32, i32, i32) {
    %c0_i32 = arith.constant 0 : i32
    %c0_i32_0 = arith.constant 0 : i32
    return %arg0, %c0_i32, %arg1 : i32, i32, i32
  }
  func.func @transform_1(%arg0: i32, %arg1: i32) -> (i32, i32, i32) {
    %c1_i32 = arith.constant 1 : i32
    %0 = arith.muli %arg0, %c1_i32 : i32
    %1 = arith.addi %0, %arg1 : i32
    %c0_i32 = arith.constant 0 : i32
    %c0_i32_0 = arith.constant 0 : i32
    %c0_i32_1 = arith.constant 0 : i32
    return %1, %c0_i32, %c0_i32_0 : i32, i32, i32
  }
  func.func @transform_2(%arg0: i32, %arg1: i32) -> (i32, i32, i32) {
    %c1_i32 = arith.constant 1 : i32
    %0 = arith.muli %arg0, %c1_i32 : i32
    %1 = arith.addi %0, %arg1 : i32
    %c0_i32 = arith.constant 0 : i32
    %c0_i32_0 = arith.constant 0 : i32
    %c0_i32_1 = arith.constant 0 : i32
    return %1, %c0_i32, %c0_i32_0 : i32, i32, i32
  }
}

</mosaic_0001>

<bundles_post_ra>
// kernel: tpu_custom_call.1
= control target key start
LH: loop header
LB: loop body
LE: loop exit
PB: predicated region body
PF: predicated region fallthrough
CT: control target
= control target key end

     0   :  { %8 = vsyncpa [#allocation3], 0  ;;  %s799_s0 = inlined_call_operand.hbm [shape: f32[2,4,256], index: 0, kind: input, shape index: {}]   ;;  %s800_s1 = inlined_call_operand.vmem [shape: f32[2,4,1], index: 1, kind: output, shape index: {0}]   ;;  %s801_s2 = inlined_call_operand.hbm [shape: f32[2,4,4], index: 2, kind: output, shape index: {1}]  }
   0x1   :  { %10 = vsyncpa [#allocation3 + $0x1], 0 }
   0x2   :  { %11 = vsyncpa [#allocation4], 0 }
   0x3   :  { %13 = vsyncpa [#allocation4 + $0x1], 0  ;;  %s621_s9 = smov 0   ;;  %s623_s10 = smov 0  }
   0x4   :  { %s625_s11 = smov 0   ;;  %s627_s12 = smov 0  }
   0x5   :  { %s629_s13 = smov 0   ;;  %s631_s14 = smov 0  }
   0x6 LB: > { %s411_s15 = sadd.s32 4294967295, %s602_s14   ;;  %s412_s16 = sadd.s32 4294967294, %s602_s14   ;;  %s602_s14 = sphi %s631_s14, %s19_s14   ;;  %s598_s13 = sphi %s629_s13, %s817_s13   ;;  %s594_s12 = sphi %s627_s12, %s816_s12   ;;  %s590_s11 = sphi %s625_s11, %s815_s11   ;;  %s586_s10 = sphi %s623_s10, %s814_s10   ;;  %s582_s9 = sphi %s621_s9, %s813_s9  }
   0x7   : > { %s31_s17 = sadd.s32 1, %s598_s13  ;;  %s40_s18 = sadd.s32 1, %s590_s11 }
   0x8   : > { %p33_p0 = scmp.ge.s32.totalorder %s31_s17, 2  ;;  %p47_p1 = scmp.ne.s32.totalorder %s590_s11, %s586_s10 }
   0x9   : > { %p48_p2 = scmp.eq.s32.totalorder %s602_s14, 0  ;;  %p53_p3 = scmp.ne.s32.totalorder %s586_s10, %s582_s9 }
   0xa   : > { %s819_s17 = smov (%p33_p0, %s31_s17), 0  ;;  %p54_p5 = scmp.eq.s32.totalorder %s411_s15, 0 }
   0xb   : > { %p662_p4 = por %p48_p2, %p47_p1  ;;  %s35_s20 = ssub.s32 %s598_s13, %s819_s17 }
   0xc   : > { %p107_p6 = scmp.eq.s32.totalorder %s411_s15, 1  ;;  %p38_p7 = scmp.eq.s32.totalorder %s35_s20, 0 }
   0xd   : > { %p668_p8 = por %p54_p5, %p53_p3  ;;  %p113_p10 = scmp.eq.s32.totalorder %s412_s16, 1 }
   0xe   : > { %p672_p9 = por %p107_p6, %p47_p1  ;;  %p439_p13 = scmp.lt.s32.totalorder %s602_s14, 2 }
   0xf   : > { %s677_s23 = scalar_select %p38_p7, %s590_s11, %s40_s18  }
  0x10   : > { %s805_s22 = scalar_select %p672_p9, 1, 0 }
  0x11   : > { %p679_p11 = por %p113_p10, %p53_p3  ;;  %s133_s25 = sand.u32 1, %s590_s11  }
  0x12   : > { %s415_s26 = sshll.u32 %s133_s25, 3  ;;  %s426_s27 = sshll.u32 %s598_s13, 7 }
  0x13   : > { %s806_s24 = scalar_select %p679_p11, 1, 0 }
  0x14   : > { %s690_s30 = scalar_lea.hbm %s799_s0, %s426_s27  ;;  %s137_s3 = scalar_lea.vmem [#allocation2], %s415_s26 }
  0x15   : > { %s147_s4 = sshll.u32 %s137_s3, 4  ;;  %p696_p0 = pnand %p439_p13, %p662_p4  ;;  %s692_s4 = int_to_ptr.vmem [resolvable:$true] %s147_s4 }
  0x16   : > { %s134_s6 = scalar_lea.sflag [#allocation3], %s133_s25  ;;  %s490_s7 = scalar_lea.hbm %s690_s30, 128 }
  0x17   : > { %p491_p3 = scmp.ne.s32.totalorder %s690_s30, %s490_s7  ;;  %p492_p5 = pneg %p696_p0 }
  0x18   : > { %s495_s16 = scalar_lea.hbm %s799_s0, 256  ;;  %p496_p4 = scmp.lt.u32.totalorder %s690_s30, %s799_s0 }
  0x19   : > { %p493_p6 = pnand %p492_p5, %p491_p3  ;;  %p497_p10 = scmp.lt.u32.totalorder %s495_s16, %s490_s7 }
  0x1a   : > { %p499_p12 = scmp.lt.u32.totalorder %s490_s7, %s690_s30 }
  0x1b   : > { %p494_p7 = pneg %p493_p6  ;;  %p498_p13 = por %p497_p10, %p496_p4 }
  0x1d   : > { %p500_p1 = por %p499_p12, %p498_p13 }
  0x1f   : > { %p501_p2 = pnand %p500_p1, %p494_p7 }
  0x21   : > { %504 = shalt.err (!%p501_p2)
}
  0x22   : > { %s505_s20 = scalar_lea.vmem %s692_s4, 128  ;;  %s604_s25 = smov [#allocation2]  }
  0x23   : > { %p506_p3 = scmp.ne.s32.totalorder %s692_s4, %s505_s20  ;;  %s510_s26 = sshll.u32 %s604_s25, 4  ;;  %s511_s26 = int_to_ptr.vmem [resolvable:$false] %s510_s26 }
  0x24   : > { %s512_s27 = scalar_lea.vmem %s511_s26, 256  ;;  %p513_p9 = scmp.lt.s32.totalorder %s692_s4, %s511_s26 }
  0x25   : > { %p508_p6 = pnand %p506_p3, %p492_p5  ;;  %p514_p4 = scmp.lt.s32.totalorder %s512_s27, %s505_s20 }
  0x27   : > { %p509_p11 = pneg %p508_p6  ;;  %p515_p10 = por %p514_p4, %p513_p9 }
  0x29   : > { %p516_p12 = pnand %p515_p10, %p509_p11 }
  0x2b   : > { %519 = shalt.err (!%p516_p12)
}
  0x2c   : > { %434 = dma.hbm_to_vmem [thread:$0]  (!%p696_p0), %s690_s30, 128, %s692_s4, %s134_s6  }
  0x2d   : > { %p808_p1 = scmp.lt.s32.totalorder %s602_s14, 3  ;;  %p809_p2 = scmp.ge.s32.totalorder %s602_s14, 1 }
  0x2f   : > { %p153_p5 = pnand %p809_p2, %p808_p1 }
  0x30   : > { %s732_s28 = sand.u32 (!%p153_p5), 1, %s586_s10  }
  0x31   : > { %156 = sbr.rel (%p153_p5) target bundleno = 290 (0x122), region = 24  ;;  %s419_s29 = sshll.u32 (!%p153_p5), %s732_s28, 3 }
  0x32   : > { %s159_s3 = scalar_lea.sflag (!%p153_p5), [#allocation3], %s732_s28  ;;  %s162_s7 = scalar_lea.vmem (!%p153_p5), [#allocation2], %s419_s29 }
  0x38   : > { %573 = dma.done.wait (%p668_p8), %s159_s3, 128  }
  0x39   : > { %575 = vsyncadd (%p668_p8), %s159_s3, 4294967168  ;;  %vm200_vm0 = vcmask 1043456   ;;  %v196_v0 = vld [vmem:[%s162_s7] sm:$0xff]  ;;  %p190_p9 = scmp.lt.s32.totalorder %s594_s12, 1  ;;  %vm206_vm1 = vcmask 3072   ;;  %s420_s8 = sshll.u32 %s732_s28, 2 }
  0x3a   : > { %v198_v1 = vcombine.high %v196_v0, %v196_v0  ;;  %v201_v2 = vsel %vm200_vm0, %v196_v0, 0.0  ;;  %s423_s15 = sshll.u32 %s594_s12, 6  ;;  %s187_s16 = scalar_lea.vmem [#allocation5], %s420_s8  ;;  %vm278_vm2 = vcmask 27648  }
  0x3b   : > { %s191_s30 = scalar_select %p190_p9, %s594_s12, 1 }
  0x3c   : > { %208 = vmatprep.subr.mxu0 %v198_v1  ;;  %272 = vmatprep.mubr.f32.mxu0 %v198_v1  ;;  %v202_v3 = vsel %vm200_vm0, %v198_v1, 0.0  ;;  %s304_s18 = sshll.u32 %s187_s16, 4  ;;  %s750_s25 = scalar_lea.hbm %s801_s2, %s423_s15  ;;  %s752_s18 = int_to_ptr.vmem [resolvable:$true] %s304_s18 }
  0x3d   : > { %209 = vmatpush1.xpose.msra.mxu0 %v196_v0  ;;  %v203_v4 = vadd.f32 %v202_v3, %v201_v2  ;;  %s421_s21 = sshll.u32 %s191_s30, 2  ;;  %s286_s26 = scalar_lea.sflag [#allocation4], %s732_s28 }
  0x3e   : > { %s193_s6 = scalar_lea.vmem %s800_s1, %s421_s21  ;;  %s520_s27 = scalar_lea.vmem %s752_s18, 64 }
  0x3f   : > { %204 = vadd.xlane.f32.xlu0 %v203_v4  ;;  %p521_p8 = scmp.ne.s32.totalorder %s752_s18, %s520_s27  ;;  %p810_p11 = scmp.ne.s32.totalorder %s805_s22, 0 }
  0x40   : > { %273 = vmatmul.mubr.f32.vlgmr.msra.gmra.mrb[0].mxu0 %v196_v0  ;;  %s605_s12 = smov [#allocation5]  }
  0x41   : > { %p522_p0 = pnand %p521_p8, %p810_p11  ;;  %s524_s29 = sshll.u32 %s605_s12, 4  ;;  %s525_s29 = int_to_ptr.vmem [resolvable:$false] %s524_s29 }
  0x42   : > { %s526_s3 = scalar_lea.vmem %s525_s29, 128  ;;  %p527_p13 = scmp.lt.s32.totalorder %s752_s18, %s525_s29 }
  0x43   : > { %p523_p7 = pneg %p522_p0  ;;  %p528_p3 = scmp.lt.s32.totalorder %s526_s3, %s520_s27 }
  0x45   : > { %p529_p6 = por %p528_p3, %p527_p13 }
  0x47   : > { %p530_p4 = pnand %p529_p6, %p523_p7 }
  0xcc   : > { %v205_v5 = vpop.xlane.xlu0 %204 }
  0xcd   : > { %207 = vst.msk [vmem:[%s193_s6] sm:$0xf] %vm206_vm1, %v205_v5 }
 0x113   : > { %v274_v6 = vpop.f32.mrb[0].mxu0 }
 0x114   : > { %279 = vst.msk [vmem:[%s187_s16] sm:$0xf] %vm278_vm2, %v274_v6  ;;  %v276_v7 = vpop.f32.mrb[1].mxu0 }
 0x115   : > { %533 = shalt.err (!%p530_p4)
}
 0x116   : > { %s534_s28 = scalar_lea.hbm %s750_s25, 64  ;;  %s538_s21 = scalar_lea.hbm %s801_s2, 128 }
 0x117   : > { %p535_p10 = scmp.ne.s32.totalorder %s750_s25, %s534_s28  ;;  %p539_p2 = scmp.lt.u32.totalorder %s750_s25, %s801_s2 }
 0x118   : > { %p540_p5 = scmp.lt.u32.totalorder %s538_s21, %s534_s28  ;;  %p542_p8 = scmp.lt.u32.totalorder %s534_s28, %s750_s25 }
 0x119   : > { %p536_p12 = pnand %p535_p10, %p810_p11 }
 0x11a   : > { %p541_p9 = por %p540_p5, %p539_p2 }
 0x11b   : > { %p537_p1 = pneg %p536_p12 }
 0x11c   : > { %p543_p0 = por %p542_p8, %p541_p9 }
 0x11e   : > { %p544_p7 = pnand %p543_p0, %p537_p1 }
 0x120   : > { %547 = shalt.err (!%p544_p7)
}
 0x121   : > { %429 = dma.vmem_to_hbm [thread:$0]  (%p810_p11), %s752_s18, 64, %s750_s25, %s286_s26  }
 0x122 PF: > { %s324_s6 = sand.u32 1, %s582_s9   ;;  %p811_p13 = scmp.ne.s32.totalorder %s806_s24, 0 }
 0x123   : > { %p812_p3 = scmp.ge.s32.totalorder %s602_s14, 2  ;;  %s325_s8 = scalar_lea.sflag [#allocation4], %s324_s6 }
 0x125   : > { %p436_p6 = pnand %p812_p3, %p811_p13 }
 0x127   : > { %577 = dma.done.wait (!%p436_p6), %s325_s8, 64  }
 0x128   : > { %579 = vsyncadd (!%p436_p6), %s325_s8, 4294967232  ;;  %s19_s14 = sadd.s32 1, %s602_s14   ;;  %s813_s9 = smov %s586_s10 }
 0x129   : > { %p16_p4 = scmp.ge.s32.totalorder %s19_s14, 4   ;;  %s814_s10 = smov %s590_s11 }
 0x12a   : > { %s815_s11 = smov %s677_s23  ;;  %s816_s12 = smov %s598_s13 }
 0x12b   : > { %s817_s13 = smov %s819_s17  ;;  %18 = sbr.rel (!%p16_p4) target bundleno = 6 (0x6), region = 81 }
 0x132   :  { %330 = vsyncpa [#allocation3], 1 }
 0x133   :  { %332 = vsyncpa [#allocation3 + $0x1], 1 }
 0x134   :  { %333 = vsyncpa [#allocation4], 1 }
 0x135   :  { %335 = vsyncpa [#allocation4 + $0x1], 1 }

</bundles_post_ra>
